<compile_context>
chip_gen: v7x
topology: tpu7x:2x2x1
jax: 0.10.0
libtpu: 0.0.40
codegen_flags: <defaults>
</compile_context>

<pallas_src>
import jax
import jax.numpy as jnp
from jax.experimental import pallas as pl
from jax.experimental.pallas import tpu as pltpu


def _round_up(x, m):
    return ((x + m - 1) // m) * m


def _pick_divisor_tile(n, preferred):
    for t in preferred:
        if t <= n and n % t == 0:
            return t
    return n


def _vmem_limit_bytes():
    """Generation-aware scoped-VMEM limit (~3/4 of physical, capped at 96 MiB)."""
    cap = 64 * 1024 * 1024
    try:
        info = pltpu.get_tpu_info()
        cap = int(getattr(info, "vmem_capacity_bytes", cap))
    except Exception:
        pass
    return max(32 * 1024 * 1024, min(96 * 1024 * 1024, (cap * 3) // 4))


def _make_zeronn_kernel(x_cast_dtype, use_scratch):
    """x_ref:(tm,tk)  w_ref:(tk,tn) [pre-transposed]  b_ref:(1,tn)  o_ref:(tm,tn)."""
    if use_scratch:
        def kernel(x_ref, w_ref, b_ref, o_ref, acc_ref):
            k = pl.program_id(2)

            @pl.when(k == 0)
            def _init():
                acc_ref[...] = jnp.zeros_like(acc_ref)

            x = x_ref[...]
            if x_cast_dtype is not None:
                x = x.astype(x_cast_dtype)
            acc_ref[...] += jnp.dot(x, w_ref[...], preferred_element_type=jnp.float32)

            @pl.when(k == pl.num_programs(2) - 1)
            def _epilogue():
                y = acc_ref[...] + b_ref[...]
                o_ref[...] = jnp.maximum(y, 0.0).astype(o_ref.dtype)
        return kernel

    def kernel(x_ref, w_ref, b_ref, o_ref):
        k = pl.program_id(2)

        @pl.when(k == 0)
        def _init():
            o_ref[...] = jnp.zeros_like(o_ref)

        x = x_ref[...]
        if x_cast_dtype is not None:
            x = x.astype(x_cast_dtype)
        # Output block index is constant across k -> o_ref is the resident
        # f32 accumulator; no scratch, no extra epilogue store pass.
        o_ref[...] += jnp.dot(x, w_ref[...], preferred_element_type=jnp.float32)

        @pl.when(k == pl.num_programs(2) - 1)
        def _epilogue():
            o_ref[...] = jnp.maximum(o_ref[...] + b_ref[...], 0.0)
    return kernel


def prepare_zeronn_params(weight, bias, *, use_bf16_matmul=False):
    """One-time parameter prep (weight-load time, NOT per call).

    weight: (hidden_dim, input_dim) PyTorch layout.
    bias:   (hidden_dim,)
    Returns weight transposed to (K_pad, N_pad) with K/N zero-padded to
    multiples of 128 (lane-dense, canonical MXU contraction), optionally
    pre-cast to bf16, and bias padded/reshaped to (1, N_pad) kept in f32.
    Padded columns are zero so relu(0 + 0) = 0 and are sliced off afterwards.
    """
    d_hid, d_in = weight.shape
    n_pad = _round_up(d_hid, 128)
    k_pad = _round_up(d_in, 128)
    w_t = jnp.transpose(weight)                                  # (K, N)
    w_p = jnp.pad(w_t, ((0, k_pad - d_in), (0, n_pad - d_hid)))  # (K_pad, N_pad)
    if use_bf16_matmul:
        w_p = w_p.astype(jnp.bfloat16)
    b_p = jnp.pad(bias, (0, n_pad - d_hid)).reshape(1, n_pad).astype(jnp.float32)
    return w_p, b_p


def zeronn_forward(x, w_padded, b_padded, *, out_features, use_bf16_matmul=False):
    """relu(x @ weight.T + bias) with pre-padded params from prepare_zeronn_params.

    x:        (B, input_dim)
    w_padded: (K_pad, N_pad)  pre-transposed (+ optionally bf16) weight
    b_padded: (1, N_pad)      f32 bias
    Returns:  (B, out_features)
    """
    B, K = x.shape
    K_pad, N_pad = w_padded.shape
    assert K_pad >= K and K_pad % 128 == 0 and N_pad % 128 == 0

    # --- tile selection --------------------------------------------------
    sublane = 16 if use_bf16_matmul else 8     # bf16 vreg packs [16,128]
    tm = min(512, _round_up(B, sublane))
    M_pad = _round_up(B, tm)
    tn = _pick_divisor_tile(N_pad, (1024, 512, 256, 128))
    tk = _pick_divisor_tile(K_pad, (512, 256, 128))
    nk = K_pad // tk

    # v7x has 2 TensorCores: keep >= 2 independent (M, N) tiles when possible
    # so megacore sharding of the "parallel" axes actually has work to split.
    if (M_pad // tm) * (N_pad // tn) < 2:
        for t in (1024, 512, 256, 128):
            if t < N_pad and N_pad % t == 0:
                tn = t
                break

    # --- per-call activation padding (M to tile, K to the prep-time K_pad) --
    x_p = x
    if M_pad != B or K_pad != K:
        x_p = jnp.pad(x, ((0, M_pad - B), (0, K_pad - K)))

    grid = (M_pad // tm, N_pad // tn, nk)

    x_cast = jnp.bfloat16 if use_bf16_matmul else None
    out_dtype = x.dtype
    use_scratch = jnp.dtype(out_dtype) != jnp.dtype(jnp.float32)

    # Deeper input pipelining only pays when the K grid is deep.
    pipe = pl.Buffered(3) if nk >= 3 else None
    x_spec = pl.BlockSpec((tm, tk), lambda i, j, k: (i, k), pipeline_mode=pipe)
    w_spec = pl.BlockSpec((tk, tn), lambda i, j, k: (k, j), pipeline_mode=pipe)
    b_spec = pl.BlockSpec((1, tn), lambda i, j, k: (0, j))

    itemsize_w = jnp.dtype(w_padded.dtype).itemsize
    cost = pl.CostEstimate(
        flops=2 * M_pad * N_pad * K_pad,
        transcendentals=0,
        bytes_accessed=(M_pad * K_pad * 4
                        + (M_pad // tm) * K_pad * N_pad * itemsize_w
                        + M_pad * N_pad * jnp.dtype(out_dtype).itemsize),
    )

    out_padded = pl.pallas_call(
        _make_zeronn_kernel(x_cast, use_scratch),
        out_shape=jax.ShapeDtypeStruct((M_pad, N_pad), out_dtype),
        grid=grid,
        in_specs=[x_spec, w_spec, b_spec],
        out_specs=pl.BlockSpec((tm, tn), lambda i, j, k: (i, j)),
        scratch_shapes=([pltpu.VMEM((tm, tn), jnp.float32)] if use_scratch else []),
        compiler_params=pltpu.CompilerParams(
            dimension_semantics=("parallel", "parallel", "arbitrary"),
            vmem_limit_bytes=_vmem_limit_bytes(),
        ),
        cost_estimate=cost,
    )(x_p, w_padded, b_padded)

    return out_padded[:B, :out_features]


if __name__ == "__main__":
    # sizes = "32-64" -> input_dim=32, hidden_dim=64 (small, synthetic)
    input_dim, hidden_dim, batch = 32, 64, 8

    key = jax.random.PRNGKey(0)
    kx, kw, kb = jax.random.split(key, 3)

    x = jax.random.normal(kx, (batch, input_dim), dtype=jnp.float32)
    # deterministic init mimicking nn.Linear's uniform(-1/sqrt(fan_in), 1/sqrt(fan_in))
    bound = 1.0 / (input_dim ** 0.5)
    weight = jax.random.uniform(kw, (hidden_dim, input_dim), jnp.float32, -bound, bound)
    bias = jax.random.uniform(kb, (hidden_dim,), jnp.float32, -bound, bound)

    # One-time prep (off the hot path): transpose + pad to lane-dense (K_pad, N_pad).
    w_p, b_p = prepare_zeronn_params(weight, bias, use_bf16_matmul=False)

    fwd = jax.jit(zeronn_forward, static_argnames=("out_features", "use_bf16_matmul"))
    out = fwd(x, w_p, b_p, out_features=hidden_dim)
    out = jax.block_until_ready(out)

    # reference check in plain JAX
    ref = jnp.maximum(x @ weight.T + bias, 0.0)
    assert out.shape == (batch, hidden_dim)
    assert jnp.allclose(out, ref, atol=1e-5, rtol=1e-5)

    print("KERNEL_OK")
</pallas_src>

<mosaic_0001>
module attributes {stable_mosaic.version = 11 : i64} {
  func.func @kernel(%arg0: i32, %arg1: i32, %arg2: i32, %arg3: memref<8x128xf32, #tpu.memory_space<vmem>>, %arg4: memref<128x128xf32, #tpu.memory_space<vmem>>, %arg5: memref<1x128xf32, #tpu.memory_space<vmem>>, %arg6: memref<8x128xf32, #tpu.memory_space<vmem>>) attributes {dimension_semantics = [#tpu.dimension_semantics<parallel>, #tpu.dimension_semantics<parallel>, #tpu.dimension_semantics<arbitrary>], iteration_bounds = array<i64: 1, 1, 1>, scalar_prefetch = 0 : i64, scratch_operands = 0 : i64, tpu.core_type = #tpu.core_type<tc>, window_params = [{transform_indices = @transform_0, window_bounds = array<i64: 8, 128>}, {transform_indices = @transform_1, window_bounds = array<i64: 128, 128>}, {transform_indices = @transform_2, window_bounds = array<i64: 1, 128>}, {transform_indices = @transform_3, window_bounds = array<i64: 8, 128>}]} {
    %c0_i32 = arith.constant 0 : i32
    %0 = arith.cmpi eq, %arg2, %c0_i32 : i32
    %1 = arith.extui %0 : i1 to i32
    %c0_i32_0 = arith.constant 0 : i32
    %2 = arith.cmpi ne, %1, %c0_i32_0 : i32
    scf.if %2 {
      %cst_10 = arith.constant 0.000000e+00 : f32
      %12 = vector.broadcast %cst_10 : f32 to vector<8x128xf32>
      %c0_11 = arith.constant 0 : index
      %c0_12 = arith.constant 0 : index
      %13 = vector.load %arg6[%c0_11, %c0_12] : memref<8x128xf32, #tpu.memory_space<vmem>>, vector<8x128xf32>
      tpu.vector_store %arg6[%c0_11, %c0_12], %12 {strides = array<i32>} : memref<8x128xf32, #tpu.memory_space<vmem>>, vector<8x128xf32>,
    } else {
    }
    %c0 = arith.constant 0 : index
    %c0_1 = arith.constant 0 : index
    %3 = vector.load %arg3[%c0, %c0_1] : memref<8x128xf32, #tpu.memory_space<vmem>>, vector<8x128xf32>
    %c0_2 = arith.constant 0 : index
    %c0_3 = arith.constant 0 : index
    %4 = vector.load %arg6[%c0_2, %c0_3] : memref<8x128xf32, #tpu.memory_space<vmem>>, vector<8x128xf32>
    %c0_4 = arith.constant 0 : index
    %c0_5 = arith.constant 0 : index
    %5 = vector.load %arg4[%c0_4, %c0_5] : memref<128x128xf32, #tpu.memory_space<vmem>>, vector<128x128xf32>
    %cst = arith.constant dense<0.000000e+00> : vector<8x128xf32>
    %6 = tpu.matmul %3, %5, %cst {dimension_numbers = #tpu.dot_dimension_numbers<[1], [0], [0], [1], [0, 0, 1, 1], [], []>} : vector<8x128xf32>, vector<128x128xf32>, vector<8x128xf32> -> vector<8x128xf32>
    %7 = arith.addf %4, %6 : vector<8x128xf32>
    %c0_6 = arith.constant 0 : index
    %c0_7 = arith.constant 0 : index
    %8 = vector.load %arg6[%c0_6, %c0_7] : memref<8x128xf32, #tpu.memory_space<vmem>>, vector<8x128xf32>
    tpu.vector_store %arg6[%c0_6, %c0_7], %7 {strides = array<i32>} : memref<8x128xf32, #tpu.memory_space<vmem>>, vector<8x128xf32>,
    %c0_i32_8 = arith.constant 0 : i32
    %9 = arith.cmpi eq, %arg2, %c0_i32_8 : i32
    %10 = arith.extui %9 : i1 to i32
    %c0_i32_9 = arith.constant 0 : i32
    %11 = arith.cmpi ne, %10, %c0_i32_9 : i32
    scf.if %11 {
      %c0_10 = arith.constant 0 : index
      %c0_11 = arith.constant 0 : index
      %12 = vector.load %arg6[%c0_10, %c0_11] : memref<8x128xf32, #tpu.memory_space<vmem>>, vector<8x128xf32>
      %c0_12 = arith.constant 0 : index
      %c0_13 = arith.constant 0 : index
      %13 = vector.load %arg5[%c0_12, %c0_13] : memref<1x128xf32, #tpu.memory_space<vmem>>, vector<1x128xf32>
      %14 = vector.broadcast %13 : vector<1x128xf32> to vector<8x128xf32>
      %15 = arith.addf %12, %14 : vector<8x128xf32>
      %cst_14 = arith.constant 0.000000e+00 : f32
      %16 = vector.broadcast %cst_14 : f32 to vector<8x128xf32>
      %17 = arith.maximumf %15, %16 : vector<8x128xf32>
      %c0_15 = arith.constant 0 : index
      %c0_16 = arith.constant 0 : index
      %18 = vector.load %arg6[%c0_15, %c0_16] : memref<8x128xf32, #tpu.memory_space<vmem>>, vector<8x128xf32>
      tpu.vector_store %arg6[%c0_15, %c0_16], %17 {strides = array<i32>} : memref<8x128xf32, #tpu.memory_space<vmem>>, vector<8x128xf32>,
    } else {
    }
    return
  }
  func.func @transform_0(%arg0: i32, %arg1: i32, %arg2: i32) -> (i32, i32) {
    %c0_i32 = arith.constant 0 : i32
    return %arg0, %arg2 : i32, i32
  }
  func.func @transform_1(%arg0: i32, %arg1: i32, %arg2: i32) -> (i32, i32) {
    %c0_i32 = arith.constant 0 : i32
    return %arg2, %arg1 : i32, i32
  }
  func.func @transform_2(%arg0: i32, %arg1: i32, %arg2: i32) -> (i32, i32) {
    %c0_i32 = arith.constant 0 : i32
    %c0_i32_0 = arith.constant 0 : i32
    return %c0_i32, %arg1 : i32, i32
  }
  func.func @transform_3(%arg0: i32, %arg1: i32, %arg2: i32) -> (i32, i32) {
    %c0_i32 = arith.constant 0 : i32
    return %arg0, %arg1 : i32, i32
  }
}

</mosaic_0001>

<bundles_post_ra>
// kernel: zeronn_forward.1
= control target key start
LH: loop header
LB: loop body
LE: loop exit
PB: predicated region body
PF: predicated region fallthrough
CT: control target
= control target key end

     0   :  { %8 = vsyncpa [#allocation3], 0  ;;  %s342_s0 = inlined_call_operand.vmem [shape: f32[8,128], index: 0, kind: input, shape index: {}]   ;;  %s343_s1 = inlined_call_operand.hbm [shape: f32[128,128], index: 1, kind: input, shape index: {}]   ;;  %s344_s2 = inlined_call_operand.vmem [shape: f32[1,128], index: 2, kind: input, shape index: {}]   ;;  %s345_s3 = inlined_call_operand.hbm [shape: f32[8,128], index: 3, kind: output, shape index: {}]  }
   0x1   :  { %9 = vsyncpa [#allocation4], 0  ;;  %s285_s12 = smov [#allocation2]   ;;  %s237_s16 = scalar_lea.hbm %s343_s1, 2048 }
   0x2   :  { %s17_s13 = sshll.u32 %s285_s12, 4  ;;  %p238_p0 = scmp.ne.s32.totalorder %s343_s1, %s237_s16  ;;  %s18_s13 = int_to_ptr.vmem [resolvable:$true] %s17_s13 }
   0x3   :  { %p241_p1 = scmp.lt.u32.totalorder %s237_s16, %s343_s1 }
   0x5   :  { %p243_p2 = pnand %p241_p1, %p238_p0 }
   0x7   :  { %246 = shalt.err (!%p243_p2)
}
   0x8   :  { %s247_s21 = scalar_lea.vmem %s18_s13, 2048  ;;  %p252_p4 = scmp.lt.s32.totalorder %s18_s13, %s18_s13 }
   0x9   :  { %p248_p3 = scmp.ne.s32.totalorder %s18_s13, %s247_s21  ;;  %p253_p5 = scmp.lt.s32.totalorder %s247_s21, %s247_s21 }
   0xb   :  { %p254_p6 = por %p253_p5, %p252_p4 }
   0xd   :  { %p255_p7 = pnand %p254_p6, %p248_p3 }
   0xf   :  { %258 = shalt.err (!%p255_p7)
}
  0x10   :  { %s286_s22 = smov 128   ;;  %s287_s23 = smov 8  }
  0x11   :  { %23 = dma.hbm_to_vmem [thread:$0]  %s343_s1, 2048, %s18_s13, [#allocation3], %s286_s22, %s286_s22, %s287_s23  }
  0x12   :  { %281 = dma.done.wait [#allocation3], 2048  }
  0x13   :  { %282 = vsyncadd [#allocation3], 4294965248  ;;  %v288_v0 = vmov 0.0|0.0   ;;  %vm289_vm0 = vmmov 0   ;;  %v290_v1 = vmov 0.0   ;;  %v36_v2 = vld [vmem:[#allocation2] sm:$0xff] }
  0x14   :  { %206 = vmatprep.subr.bf16.mxu0 %v288_v0  ;;  %203 = vmatprep.mubr.msk.f32.mxu0 %vm289_vm0, %v290_v1  ;;  %v37_v3 = vld [vmem:[#allocation2 + $0x8] sm:$0xff]  ;;  %v38_v4 = vld [vmem:[#allocation2 + $0x10] sm:$0xff]  ;;  %v39_v6 = vld [vmem:[#allocation2 + $0x18] sm:$0xff]  ;;  %s291_s29 = smov [#allocation5]  }
  0x15   :  { %v207_v5 = vpack.c.bf16 %v37_v3, %v36_v2  ;;  %v210_v7 = vpack.c.bf16 %v39_v6, %v38_v4  ;;  %v40_v8 = vld [vmem:[#allocation2 + $0x20] sm:$0xff]  ;;  %v41_v9 = vld [vmem:[#allocation2 + $0x28] sm:$0xff]  ;;  %v42_v11 = vld [vmem:[#allocation2 + $0x30] sm:$0xff]  ;;  %s144_s30 = sshll.u32 %s291_s29, 4  ;;  %s145_s30 = int_to_ptr.vmem [resolvable:$true] %s144_s30 }
  0x16   :  { %v213_v10 = vpack.c.bf16 %v41_v9, %v40_v8  ;;  %v43_v12 = vld [vmem:[#allocation2 + $0x38] sm:$0xff]  ;;  %v44_v14 = vld [vmem:[#allocation2 + $0x40] sm:$0xff]  ;;  %v45_v15 = vld [vmem:[#allocation2 + $0x48] sm:$0xff]  ;;  %s259_s4 = scalar_lea.vmem %s145_s30, 128  ;;  %p264_p9 = scmp.lt.s32.totalorder %s145_s30, %s145_s30 }
  0x17   :  { %208 = vmatpush3.bf16.msra.mxu0 %v207_v5  ;;  %v216_v13 = vpack.c.bf16 %v43_v12, %v42_v11  ;;  %v219_v16 = vpack.c.bf16 %v45_v15, %v44_v14  ;;  %v46_v17 = vld [vmem:[#allocation2 + $0x50] sm:$0xff]  ;;  %v47_v18 = vld [vmem:[#allocation2 + $0x58] sm:$0xff]  ;;  %v48_v20 = vld [vmem:[#allocation2 + $0x60] sm:$0xff]  ;;  %p260_p8 = scmp.ne.s32.totalorder %s145_s30, %s259_s4  ;;  %p265_p10 = scmp.lt.s32.totalorder %s259_s4, %s259_s4 }
  0x18   :  { %209 = vmatprep.subr.bf16.mxu0 %v288_v0  ;;  %v222_v19 = vpack.c.bf16 %v47_v18, %v46_v17  ;;  %v49_v21 = vld [vmem:[#allocation2 + $0x68] sm:$0xff]  ;;  %v50_v23 = vld [vmem:[#allocation2 + $0x70] sm:$0xff]  ;;  %v51_v24 = vld [vmem:[#allocation2 + $0x78] sm:$0xff] }
  0x19   :  { %v225_v22 = vpack.c.bf16 %v49_v21, %v48_v20  ;;  %v228_v25 = vpack.c.bf16 %v51_v24, %v50_v23  ;;  %v34_v26 = vld [vmem:[%s342_s0] sm:$0xff]  ;;  %p266_p11 = por %p265_p10, %p264_p9 }
  0x1a   :  { %v153_v28 = vld [vmem:[%s344_s2] ss:$0 sm:$0xff] }
  0x1b   :  { %211 = vmatpush3.bf16.msra.mxu0 %v210_v7  ;;  %p267_p12 = pnand %p266_p11, %p260_p8 }
  0x1c   :  { %212 = vmatprep.subr.bf16.mxu0 %v288_v0 }
  0x1f   :  { %214 = vmatpush3.bf16.msra.mxu0 %v213_v10 }
  0x20   :  { %215 = vmatprep.subr.bf16.mxu0 %v288_v0 }
  0x23   :  { %217 = vmatpush3.bf16.msra.mxu0 %v216_v13 }
  0x24   :  { %218 = vmatprep.subr.bf16.mxu0 %v288_v0 }
  0x27   :  { %220 = vmatpush3.bf16.msra.mxu0 %v219_v16 }
  0x28   :  { %221 = vmatprep.subr.bf16.mxu0 %v288_v0 }
  0x2b   :  { %223 = vmatpush3.bf16.msra.mxu0 %v222_v19 }
  0x2c   :  { %224 = vmatprep.subr.bf16.mxu0 %v288_v0 }
  0x2f   :  { %226 = vmatpush3.bf16.msra.mxu0 %v225_v22 }
  0x30   :  { %227 = vmatprep.subr.bf16.mxu0 %v288_v0 }
  0x33   :  { %229 = vmatpush3.bf16.msra.mxu0 %v228_v25 }
  0x36   :  { %204 = vmatmul.mubr.f32.vlgmr.msra.gmra.mrb[0].mxu0 %v34_v26 }
 0x109   :  { %v118_v27 = vpop.f32.mrb[0].mxu0 }
 0x10a   :  { %v205_v29 = vpop.f32.mrb[1].mxu0  ;;  %v135_v30 = vadd.f32 %v153_v28, %v118_v27 }
 0x10c   :  { %v136_v31 = vmax.f32 %v135_v30, 0.0 }
 0x10e   :  { %137 = vst [vmem:[#allocation5] sm:$0xff] %v136_v31 }
 0x10f   :  { %270 = shalt.err (!%p267_p12)
}
 0x110   :  { %s271_s6 = scalar_lea.hbm %s345_s3, 128 }
 0x111   :  { %p272_p13 = scmp.ne.s32.totalorder %s345_s3, %s271_s6  ;;  %p275_p0 = scmp.lt.u32.totalorder %s271_s6, %s345_s3 }
 0x113   :  { %p277_p1 = pnand %p275_p0, %p272_p13 }
 0x115   :  { %280 = shalt.err (!%p277_p1)
}
 0x116   :  { %147 = dma.vmem_to_hbm [thread:$0]  %s145_s30, 128, %s345_s3, [#allocation4]  }
 0x117   :  { %283 = dma.done.wait [#allocation4], 128  }
 0x118   :  { %284 = vsyncadd [#allocation4], 4294967168 }
 0x119   :  { %151 = vsyncpa [#allocation3], 1 }
 0x11a   :  { %152 = vsyncpa [#allocation4], 1 }

</bundles_post_ra>
